<compile_context>
chip_gen: v7x
topology: tpu7x:2x2x1
jax: 0.10.0
libtpu: 0.0.40
codegen_flags: <defaults>
</compile_context>

<pallas_src>
import functools

import numpy as np
import jax
import jax.numpy as jnp
from jax.experimental import pallas as pl
from jax.experimental.pallas import tpu as pltpu


# ----------------------------------------------------------------------------
# helpers copied from the torch reference (pure python / numpy glue)
# ----------------------------------------------------------------------------
def _make_span_from_seeds(seeds, span, total=None):
    inds = []
    for seed in seeds:
        for i in range(seed, seed + span):
            if total is not None and i >= total:
                break
            elif i not in inds:
                inds.append(int(i))
    return np.array(inds)


def _round_up(x, m):
    return ((x + m - 1) // m) * m


# ----------------------------------------------------------------------------
# Fused Pallas kernel: one grid step == one batch element.
# Inputs  : patches (S, CK), mask (S, 1), padded weights/tokens (lane = 128)
# Outputs : z (S, Fp), c_body (S, Fp), c_start (1, Fp), pos (S, 1), gram (S, L)
# ----------------------------------------------------------------------------
def _fused_forward_kernel(patches_ref, mask_ref, enc_w_ref, enc_b_ref,
                          ctx_w_ref, ctx_b_ref, mtok_ref, stok_ref,
                          z_ref, cbody_ref, cstart_ref, pos_ref, gram_ref,
                          *, inv_temp, eps_sq):
    S = patches_ref.shape[1]
    L = gram_ref.shape[2]

    # --- encoder: Conv1d(stride == kernel) as a patch matmul + bias (MXU) ---
    patches = patches_ref[0]                                        # (S, CK)
    z = jnp.dot(patches, enc_w_ref[...],
                preferred_element_type=jnp.float32) + enc_b_ref[...]  # (S, Fp)
    z_ref[0] = z

    # --- context_fn: mask-token replace + start token + Linear + tanh -------
    m = mask_ref[0]                                                 # (S, 1) ∈ {0,1}
    z_masked = z * (1.0 - m) + mtok_ref[...] * m                    # (S, Fp)
    ctx_w = ctx_w_ref[...]
    ctx_b = ctx_b_ref[...]
    c_start = jnp.tanh(jnp.dot(stok_ref[...], ctx_w,
                               preferred_element_type=jnp.float32) + ctx_b)
    c_body = jnp.tanh(jnp.dot(z_masked, ctx_w,
                              preferred_element_type=jnp.float32) + ctx_b)
    cstart_ref[0] = c_start                                         # (1, Fp)
    cbody_ref[0] = c_body                                           # (S, Fp)

    # --- cosine-similarity logits (rsqrt on EUP, Gram matrix on MXU) --------
    # 1/max(||x||, eps) == rsqrt(max(||x||^2, eps^2))  (torch eps = 1e-8)
    z_sq = jnp.sum(z * z, axis=-1, keepdims=True)                   # (S, 1)
    c_sq = jnp.sum(c_body * c_body, axis=-1, keepdims=True)         # (S, 1)
    zn = z * jax.lax.rsqrt(jnp.maximum(z_sq, eps_sq))
    cn = c_body * jax.lax.rsqrt(jnp.maximum(c_sq, eps_sq))

    # positive logit: cos(z_s, c_s) / temp
    pos_ref[0] = jnp.sum(zn * cn, axis=-1, keepdims=True) * inv_temp

    # full negative table: gram[s, j] = cos(z_s, z_j) / temp  (z_s vs z_j, MXU)
    gram = jax.lax.dot_general(
        zn, zn, dimension_numbers=(((1,), (1,)), ((), ())),
        preferred_element_type=jnp.float32) * inv_temp               # (S, S)
    gram_ref[0] = jnp.zeros((S, L), dtype=jnp.float32)               # lane-dense init
    gram_ref[0, :, 0:S] = gram


# ----------------------------------------------------------------------------
# Model (deterministic synthetic parameters; no checkpoint loading)
# ----------------------------------------------------------------------------
class BendingCollegeWav2VecJAX:
    def __init__(self, in_channels, feat, kernel, mask_rate=0.1, mask_span=6,
                 temp=0.5, num_negatives=20, key=None):
        if key is None:
            key = jax.random.PRNGKey(0)
        k1, k2, k3, k4, k5 = jax.random.split(key, 5)
        self.in_channels = in_channels
        self.feat = feat
        self.kernel = kernel
        self.mask_rate = mask_rate
        self.mask_span = mask_span
        self.temp = temp
        self.num_negatives = num_negatives
        self.f_pad = _round_up(feat, 128)      # lane-dense feature width

        CK = in_channels * kernel
        Fp = self.f_pad

        # raw parameters (same init scheme / shapes as before)
        scale_e = 1.0 / np.sqrt(CK)
        enc_w = jax.random.normal(k1, (CK, feat), jnp.float32) * scale_e
        enc_b = jax.random.normal(k2, (feat,), jnp.float32) * 0.01
        scale_c = 1.0 / np.sqrt(feat)
        ctx_w = jax.random.normal(k3, (feat, feat), jnp.float32) * scale_c
        mask_token = jax.random.normal(k4, (feat,), jnp.float32)
        start_token = jax.random.normal(k5, (feat,), jnp.float32)

        # zero-pad the feature axis to 128 lanes.  Padding lanes of z / c are
        # exactly 0 (zero weight cols, zero bias, tanh(0)=0), so norms and
        # cosines over the padded width equal the real-feature values.
        self.enc_w = jnp.zeros((CK, Fp), jnp.float32).at[:, :feat].set(enc_w)
        self.enc_b = jnp.zeros((1, Fp), jnp.float32).at[:, :feat].set(enc_b)
        self.ctx_w = jnp.zeros((Fp, Fp), jnp.float32).at[:feat, :feat].set(ctx_w)
        self.ctx_b = jnp.zeros((1, Fp), jnp.float32)
        self.mask_token = jnp.zeros((1, Fp), jnp.float32).at[:, :feat].set(mask_token)
        self.start_token = jnp.zeros((1, Fp), jnp.float32).at[:, :feat].set(start_token)

    # ------------------------------------------------------------------ fused
    def _fused_forward(self, patches, mask_f):
        B, S, CK = patches.shape
        Fp = self.f_pad
        L = _round_up(S, 128)                  # lane-dense cosine table width

        kern = functools.partial(
            _fused_forward_kernel,
            inv_temp=1.0 / float(self.temp),
            eps_sq=1e-16,                      # (torch cosine eps 1e-8)^2
        )

        flops = B * (2 * S * CK * Fp + 2 * (S + 1) * Fp * Fp
                     + 2 * S * S * Fp + 10 * S * Fp)
        transcendentals = B * ((S + 1) * Fp + 2 * S)
        bytes_accessed = 4 * (B * S * CK + B * S
                              + CK * Fp + Fp * Fp + 4 * Fp
                              + B * (2 * S * Fp + Fp + S + S * L))

        grid_spec = pltpu.PrefetchScalarGridSpec(
            num_scalar_prefetch=0,
            grid=(B,),
            in_specs=[
                pl.BlockSpec((1, S, CK), lambda b: (b, 0, 0)),   # patches
                pl.BlockSpec((1, S, 1), lambda b: (b, 0, 0)),    # mask (0/1 f32)
                pl.BlockSpec((CK, Fp), lambda b: (0, 0)),        # enc_w
                pl.BlockSpec((1, Fp), lambda b: (0, 0)),         # enc_b
                pl.BlockSpec((Fp, Fp), lambda b: (0, 0)),        # ctx_w
                pl.BlockSpec((1, Fp), lambda b: (0, 0)),         # ctx_b
                pl.BlockSpec((1, Fp), lambda b: (0, 0)),         # mask_token
                pl.BlockSpec((1, Fp), lambda b: (0, 0)),         # start_token
            ],
            out_specs=[
                pl.BlockSpec((1, S, Fp), lambda b: (b, 0, 0)),   # z
                pl.BlockSpec((1, S, Fp), lambda b: (b, 0, 0)),   # c rows 1..S
                pl.BlockSpec((1, 1, Fp), lambda b: (b, 0, 0)),   # c row 0 (start)
                pl.BlockSpec((1, S, 1), lambda b: (b, 0, 0)),    # positive logit
                pl.BlockSpec((1, S, L), lambda b: (b, 0, 0)),    # cosine table
            ],
        )
        out_shape = (
            jax.ShapeDtypeStruct((B, S, Fp), jnp.float32),
            jax.ShapeDtypeStruct((B, S, Fp), jnp.float32),
            jax.ShapeDtypeStruct((B, 1, Fp), jnp.float32),
            jax.ShapeDtypeStruct((B, S, 1), jnp.float32),
            jax.ShapeDtypeStruct((B, S, L), jnp.float32),
        )
        return pl.pallas_call(
            kern,
            out_shape=out_shape,
            grid_spec=grid_spec,
            compiler_params=pltpu.CompilerParams(
                dimension_semantics=("parallel",),        # 2 TCs on v7x
                vmem_limit_bytes=32 * 1024 * 1024,        # fits v7x's 64 MiB VMEM
            ),
            cost_estimate=pl.CostEstimate(
                flops=int(flops),
                transcendentals=int(transcendentals),
                bytes_accessed=int(bytes_accessed)),
        )(patches, mask_f, self.enc_w, self.enc_b, self.ctx_w, self.ctx_b,
          self.mask_token, self.start_token)

    # ---------------------------------------------------------------- forward
    def forward(self, x, key):
        B, C, T = x.shape
        ker = self.kernel
        F = self.feat
        N = self.num_negatives
        S = T // ker

        # deterministic eval-path mask of the torch module
        half_avg_num_seeds = max(1, int(S * self.mask_rate * 0.5))
        if S <= self.mask_span * half_avg_num_seeds:
            raise ValueError('Masking the entire span, pointless.')
        seeds = (S // half_avg_num_seeds) * np.arange(half_avg_num_seeds).astype(int)
        inds = _make_span_from_seeds(seeds, self.mask_span)
        mask_np = np.zeros((B, S), dtype=bool)
        mask_np[:, inds] = True
        mask = jnp.asarray(mask_np)
        mask_f = mask.astype(jnp.float32)[..., None]              # (B, S, 1)

        # im2col at the input boundary: (B, C, T) -> (B, S, C*kernel)
        patches = x[:, :, :S * ker].reshape(B, C, S, ker)
        patches = jnp.transpose(patches, (0, 2, 1, 3)).reshape(B, S, C * ker)

        z_pad, c_body, c_start, pos, gram = self._fused_forward(patches, mask_f)

        z_bsf = z_pad[..., :F]                                    # (B, S, F)
        z = jnp.transpose(z_bsf, (0, 2, 1))                       # torch (B, F, S)
        embedding = c_start[:, 0, :F]                             # (B, F)

        # negative sampling: same randint as torch (values in [0, S-2]),
        # used as per-batch row indices into z.
        neg_idx = jax.random.randint(
            key, (B, S * N), 0, S - 1).reshape(B, S, N)

        # logits: col 0 = positive, cols 1..N gathered from the in-kernel
        # cosine table (no (B,S,N,F) negatives gather needed).
        neg_logits = jnp.take_along_axis(gram, neg_idx, axis=-1)  # (B, S, N)
        logits = jnp.concatenate([pos, neg_logits], axis=-1)      # (B, S, N+1)

        # TODO(synk): torch's `logits[1:][negative_in_target] = -inf` is
        # shape-mismatched dead code that never executes in practice (exact
        # float equality between tanh-bounded context rows and raw z rows);
        # we apply the intended masking to the negative slots instead.
        c1 = c_body[..., :F]
        eq = jnp.all(c1[:, :, None, :] == z_bsf[:, None, :, :], axis=-1)  # (B,S,S)
        negative_in_target = jnp.take_along_axis(eq, neg_idx, axis=-1)    # (B,S,N)
        logits = logits.at[..., 1:].set(
            jnp.where(negative_in_target, -jnp.inf, logits[..., 1:]))

        return logits.reshape(-1, N + 1), z, mask, embedding


# ----------------------------------------------------------------------------
if __name__ == "__main__":
    key = jax.random.PRNGKey(0)
    k_x, k_param, k_neg = jax.random.split(key, 3)

    B, C, T = 2, 4, 96           # batch, EEG channels, time samples
    FEAT, KERNEL = 32, 8         # encoder feature dim, conv kernel == stride
    NUM_NEG = 20
    S = T // KERNEL              # encoded sequence length = 12

    x = jax.random.normal(k_x, (B, C, T), jnp.float32)
    model = BendingCollegeWav2VecJAX(
        in_channels=C, feat=FEAT, kernel=KERNEL,
        mask_rate=0.1, mask_span=6, temp=0.5,
        num_negatives=NUM_NEG, key=k_param)

    logits, z, mask, embedding = model.forward(x, k_neg)
    jax.block_until_ready((logits, z, embedding))

    assert logits.shape == (B * S, NUM_NEG + 1)
    assert z.shape == (B, FEAT, S)
    assert mask.shape == (B, S)
    assert embedding.shape == (B, FEAT)
    assert bool(jnp.isfinite(logits).all())

    print("KERNEL_OK")
</pallas_src>

<mosaic_0001>
module attributes {stable_mosaic.version = 11 : i64} {
  func.func @_fused_forward_kernel(%arg0: i32, %arg1: memref<1x12x32xf32, #tpu.memory_space<vmem>>, %arg2: memref<1x12x1xf32, #tpu.memory_space<vmem>>, %arg3: memref<32x128xf32, #tpu.memory_space<vmem>>, %arg4: memref<1x128xf32, #tpu.memory_space<vmem>>, %arg5: memref<128x128xf32, #tpu.memory_space<vmem>>, %arg6: memref<1x128xf32, #tpu.memory_space<vmem>>, %arg7: memref<1x128xf32, #tpu.memory_space<vmem>>, %arg8: memref<1x128xf32, #tpu.memory_space<vmem>>, %arg9: memref<1x12x128xf32, #tpu.memory_space<vmem>>, %arg10: memref<1x12x128xf32, #tpu.memory_space<vmem>>, %arg11: memref<1x1x128xf32, #tpu.memory_space<vmem>>, %arg12: memref<1x12x1xf32, #tpu.memory_space<vmem>>, %arg13: memref<1x12x128xf32, #tpu.memory_space<vmem>>) attributes {dimension_semantics = [#tpu.dimension_semantics<parallel>], iteration_bounds = array<i64: 2>, scalar_prefetch = 0 : i64, scratch_operands = 0 : i64, tpu.core_type = #tpu.core_type<tc>, window_params = [{transform_indices = @transform_0, window_bounds = array<i64: 1, 12, 32>}, {transform_indices = @transform_1, window_bounds = array<i64: 1, 12, 1>}, {pipeline_mode = #tpu.pipeline_mode<synchronous>, transform_indices = @transform_2, window_bounds = array<i64: 32, 128>}, {pipeline_mode = #tpu.pipeline_mode<synchronous>, transform_indices = @transform_3, window_bounds = array<i64: 1, 128>}, {pipeline_mode = #tpu.pipeline_mode<synchronous>, transform_indices = @transform_4, window_bounds = array<i64: 128, 128>}, {pipeline_mode = #tpu.pipeline_mode<synchronous>, transform_indices = @transform_5, window_bounds = array<i64: 1, 128>}, {pipeline_mode = #tpu.pipeline_mode<synchronous>, transform_indices = @transform_6, window_bounds = array<i64: 1, 128>}, {pipeline_mode = #tpu.pipeline_mode<synchronous>, transform_indices = @transform_7, window_bounds = array<i64: 1, 128>}, {transform_indices = @transform_8, window_bounds = array<i64: 1, 12, 128>}, {transform_indices = @transform_9, window_bounds = array<i64: 1, 12, 128>}, {transform_indices = @transform_10, window_bounds = array<i64: 1, 1, 128>}, {transform_indices = @transform_11, window_bounds = array<i64: 1, 12, 1>}, {transform_indices = @transform_12, window_bounds = array<i64: 1, 12, 128>}]} {
    %c0 = arith.constant 0 : index
    %c0_0 = arith.constant 0 : index
    %c0_1 = arith.constant 0 : index
    %0 = vector.load %arg1[%c0, %c0_0, %c0_1] : memref<1x12x32xf32, #tpu.memory_space<vmem>>, vector<1x12x32xf32>
    %1 = vector.shape_cast %0 : vector<1x12x32xf32> to vector<12x32xf32>
    %c0_2 = arith.constant 0 : index
    %c0_3 = arith.constant 0 : index
    %2 = vector.load %arg3[%c0_2, %c0_3] : memref<32x128xf32, #tpu.memory_space<vmem>>, vector<32x128xf32>
    %cst = arith.constant dense<0.000000e+00> : vector<12x128xf32>
    %3 = tpu.matmul %1, %2, %cst {dimension_numbers = #tpu.dot_dimension_numbers<[1], [0], [0], [1], [0, 0, 1, 1], [], []>} : vector<12x32xf32>, vector<32x128xf32>, vector<12x128xf32> -> vector<12x128xf32>
    %c0_4 = arith.constant 0 : index
    %c0_5 = arith.constant 0 : index
    %4 = vector.load %arg4[%c0_4, %c0_5] : memref<1x128xf32, #tpu.memory_space<vmem>>, vector<1x128xf32>
    %5 = vector.broadcast %4 : vector<1x128xf32> to vector<12x128xf32>
    %6 = arith.addf %3, %5 : vector<12x128xf32>
    %c0_6 = arith.constant 0 : index
    %c0_7 = arith.constant 0 : index
    %c0_8 = arith.constant 0 : index
    %7 = vector.load %arg9[%c0_6, %c0_7, %c0_8] : memref<1x12x128xf32, #tpu.memory_space<vmem>>, vector<1x12x128xf32>
    %8 = vector.shape_cast %7 : vector<1x12x128xf32> to vector<12x128xf32>
    %9 = vector.shape_cast %6 : vector<12x128xf32> to vector<1x12x128xf32>
    tpu.vector_store %arg9[%c0_6, %c0_7, %c0_8], %9 {strides = array<i32>} : memref<1x12x128xf32, #tpu.memory_space<vmem>>, vector<1x12x128xf32>,
    %c0_9 = arith.constant 0 : index
    %c0_10 = arith.constant 0 : index
    %c0_11 = arith.constant 0 : index
    %10 = vector.load %arg2[%c0_9, %c0_10, %c0_11] : memref<1x12x1xf32, #tpu.memory_space<vmem>>, vector<1x12x1xf32>
    %11 = vector.shape_cast %10 : vector<1x12x1xf32> to vector<12x1xf32>
    %cst_12 = arith.constant 1.000000e+00 : f32
    %12 = vector.broadcast %cst_12 : f32 to vector<12x1xf32>
    %13 = arith.subf %12, %11 : vector<12x1xf32>
    %14 = vector.broadcast %13 : vector<12x1xf32> to vector<12x128xf32>
    %15 = arith.mulf %6, %14 : vector<12x128xf32>
    %c0_13 = arith.constant 0 : index
    %c0_14 = arith.constant 0 : index
    %16 = vector.load %arg7[%c0_13, %c0_14] : memref<1x128xf32, #tpu.memory_space<vmem>>, vector<1x128xf32>
    %17 = vector.broadcast %16 : vector<1x128xf32> to vector<12x128xf32>
    %18 = vector.broadcast %11 : vector<12x1xf32> to vector<12x128xf32>
    %19 = arith.mulf %17, %18 : vector<12x128xf32>
    %20 = arith.addf %15, %19 : vector<12x128xf32>
    %c0_15 = arith.constant 0 : index
    %c0_16 = arith.constant 0 : index
    %21 = vector.load %arg5[%c0_15, %c0_16] : memref<128x128xf32, #tpu.memory_space<vmem>>, vector<128x128xf32>
    %c0_17 = arith.constant 0 : index
    %c0_18 = arith.constant 0 : index
    %22 = vector.load %arg6[%c0_17, %c0_18] : memref<1x128xf32, #tpu.memory_space<vmem>>, vector<1x128xf32>
    %c0_19 = arith.constant 0 : index
    %c0_20 = arith.constant 0 : index
    %23 = vector.load %arg8[%c0_19, %c0_20] : memref<1x128xf32, #tpu.memory_space<vmem>>, vector<1x128xf32>
    %cst_21 = arith.constant dense<0.000000e+00> : vector<1x128xf32>
    %24 = tpu.matmul %23, %21, %cst_21 {dimension_numbers = #tpu.dot_dimension_numbers<[1], [0], [0], [1], [0, 0, 1, 1], [], []>} : vector<1x128xf32>, vector<128x128xf32>, vector<1x128xf32> -> vector<1x128xf32>
    %25 = arith.addf %24, %22 : vector<1x128xf32>
    %26 = math.tanh %25 : vector<1x128xf32>
    %cst_22 = arith.constant dense<0.000000e+00> : vector<12x128xf32>
    %27 = tpu.matmul %20, %21, %cst_22 {dimension_numbers = #tpu.dot_dimension_numbers<[1], [0], [0], [1], [0, 0, 1, 1], [], []>} : vector<12x128xf32>, vector<128x128xf32>, vector<12x128xf32> -> vector<12x128xf32>
    %28 = vector.broadcast %22 : vector<1x128xf32> to vector<12x128xf32>
    %29 = arith.addf %27, %28 : vector<12x128xf32>
    %30 = math.tanh %29 : vector<12x128xf32>
    %c0_23 = arith.constant 0 : index
    %c0_24 = arith.constant 0 : index
    %c0_25 = arith.constant 0 : index
    %31 = vector.load %arg11[%c0_23, %c0_24, %c0_25] : memref<1x1x128xf32, #tpu.memory_space<vmem>>, vector<1x1x128xf32>
    %32 = vector.shape_cast %31 : vector<1x1x128xf32> to vector<1x128xf32>
    %33 = vector.shape_cast %26 : vector<1x128xf32> to vector<1x1x128xf32>
    tpu.vector_store %arg11[%c0_23, %c0_24, %c0_25], %33 {strides = array<i32>} : memref<1x1x128xf32, #tpu.memory_space<vmem>>, vector<1x1x128xf32>,
    %c0_26 = arith.constant 0 : index
    %c0_27 = arith.constant 0 : index
    %c0_28 = arith.constant 0 : index
    %34 = vector.load %arg10[%c0_26, %c0_27, %c0_28] : memref<1x12x128xf32, #tpu.memory_space<vmem>>, vector<1x12x128xf32>
    %35 = vector.shape_cast %34 : vector<1x12x128xf32> to vector<12x128xf32>
    %36 = vector.shape_cast %30 : vector<12x128xf32> to vector<1x12x128xf32>
    tpu.vector_store %arg10[%c0_26, %c0_27, %c0_28], %36 {strides = array<i32>} : memref<1x12x128xf32, #tpu.memory_space<vmem>>, vector<1x12x128xf32>,
    %37 = arith.mulf %6, %6 : vector<12x128xf32>
    %cst_29 = arith.constant dense<0.000000e+00> : vector<12xf32>
    %38 = vector.multi_reduction <add>, %37, %cst_29 [1] : vector<12x128xf32> to vector<12xf32>
    %39 = vector.shape_cast %38 : vector<12xf32> to vector<12x1xf32>
    %40 = arith.mulf %30, %30 : vector<12x128xf32>
    %cst_30 = arith.constant dense<0.000000e+00> : vector<12xf32>
    %41 = vector.multi_reduction <add>, %40, %cst_30 [1] : vector<12x128xf32> to vector<12xf32>
    %42 = vector.shape_cast %41 : vector<12xf32> to vector<12x1xf32>
    %cst_31 = arith.constant 1.000000e-16 : f32
    %43 = vector.broadcast %cst_31 : f32 to vector<12x1xf32>
    %44 = arith.maximumf %39, %43 : vector<12x1xf32>
    %45 = math.rsqrt %44 : vector<12x1xf32>
    %46 = vector.broadcast %45 : vector<12x1xf32> to vector<12x128xf32>
    %47 = arith.mulf %6, %46 : vector<12x128xf32>
    %cst_32 = arith.constant 1.000000e-16 : f32
    %48 = vector.broadcast %cst_32 : f32 to vector<12x1xf32>
    %49 = arith.maximumf %42, %48 : vector<12x1xf32>
    %50 = math.rsqrt %49 : vector<12x1xf32>
    %51 = vector.broadcast %50 : vector<12x1xf32> to vector<12x128xf32>
    %52 = arith.mulf %30, %51 : vector<12x128xf32>
    %53 = arith.mulf %47, %52 : vector<12x128xf32>
    %cst_33 = arith.constant dense<0.000000e+00> : vector<12xf32>
    %54 = vector.multi_reduction <add>, %53, %cst_33 [1] : vector<12x128xf32> to vector<12xf32>
    %55 = vector.shape_cast %54 : vector<12xf32> to vector<12x1xf32>
    %cst_34 = arith.constant 2.000000e+00 : f32
    %56 = vector.broadcast %cst_34 : f32 to vector<12x1xf32>
    %57 = arith.mulf %55, %56 : vector<12x1xf32>
    %c0_35 = arith.constant 0 : index
    %c0_36 = arith.constant 0 : index
    %c0_37 = arith.constant 0 : index
    %58 = vector.load %arg12[%c0_35, %c0_36, %c0_37] : memref<1x12x1xf32, #tpu.memory_space<vmem>>, vector<1x12x1xf32>
    %59 = vector.shape_cast %58 : vector<1x12x1xf32> to vector<12x1xf32>
    %60 = vector.shape_cast %57 : vector<12x1xf32> to vector<1x12x1xf32>
    tpu.vector_store %arg12[%c0_35, %c0_36, %c0_37], %60 {strides = array<i32>} : memref<1x12x1xf32, #tpu.memory_space<vmem>>, vector<1x12x1xf32>,
    %cst_38 = arith.constant dense<0.000000e+00> : vector<12x12xf32>
    %61 = tpu.matmul %47, %47, %cst_38 {dimension_numbers = #tpu.dot_dimension_numbers<[1], [1], [0], [0], [0, 0, 1, 0], [], []>} : vector<12x128xf32>, vector<12x128xf32>, vector<12x12xf32> -> vector<12x12xf32>
    %cst_39 = arith.constant 2.000000e+00 : f32
    %62 = vector.broadcast %cst_39 : f32 to vector<12x12xf32>
    %63 = arith.mulf %61, %62 : vector<12x12xf32>
    %cst_40 = arith.constant 0.000000e+00 : f32
    %64 = vector.broadcast %cst_40 : f32 to vector<12x128xf32>
    %c0_41 = arith.constant 0 : index
    %c0_42 = arith.constant 0 : index
    %c0_43 = arith.constant 0 : index
    %65 = vector.load %arg13[%c0_41, %c0_42, %c0_43] : memref<1x12x128xf32, #tpu.memory_space<vmem>>, vector<1x12x128xf32>
    %66 = vector.shape_cast %65 : vector<1x12x128xf32> to vector<12x128xf32>
    %67 = vector.shape_cast %64 : vector<12x128xf32> to vector<1x12x128xf32>
    tpu.vector_store %arg13[%c0_41, %c0_42, %c0_43], %67 {strides = array<i32>} : memref<1x12x128xf32, #tpu.memory_space<vmem>>, vector<1x12x128xf32>,
    %c0_44 = arith.constant 0 : index
    %c0_45 = arith.constant 0 : index
    %c0_46 = arith.constant 0 : index
    %68 = vector.load %arg13[%c0_44, %c0_45, %c0_46] : memref<1x12x128xf32, #tpu.memory_space<vmem>>, vector<1x12x12xf32>
    %69 = vector.shape_cast %68 : vector<1x12x12xf32> to vector<12x12xf32>
    %70 = vector.shape_cast %63 : vector<12x12xf32> to vector<1x12x12xf32>
    tpu.vector_store %arg13[%c0_44, %c0_45, %c0_46], %70 {strides = array<i32>} : memref<1x12x128xf32, #tpu.memory_space<vmem>>, vector<1x12x12xf32>,
    return
  }
  func.func @transform_0(%arg0: i32) -> (i32, i32, i32) {
    %c0_i32 = arith.constant 0 : i32
    %c0_i32_0 = arith.constant 0 : i32
    %c0_i32_1 = arith.constant 0 : i32
    return %arg0, %c0_i32, %c0_i32_0 : i32, i32, i32
  }
  func.func @transform_1(%arg0: i32) -> (i32, i32, i32) {
    %c0_i32 = arith.constant 0 : i32
    %c0_i32_0 = arith.constant 0 : i32
    %c0_i32_1 = arith.constant 0 : i32
    return %arg0, %c0_i32, %c0_i32_0 : i32, i32, i32
  }
  func.func @transform_2(%arg0: i32) -> (i32, i32) {
    %c0_i32 = arith.constant 0 : i32
    %c0_i32_0 = arith.constant 0 : i32
    %c0_i32_1 = arith.constant 0 : i32
    return %c0_i32, %c0_i32_0 : i32, i32
  }
  func.func @transform_3(%arg0: i32) -> (i32, i32) {
    %c0_i32 = arith.constant 0 : i32
    %c0_i32_0 = arith.constant 0 : i32
    %c0_i32_1 = arith.constant 0 : i32
    return %c0_i32, %c0_i32_0 : i32, i32
  }
  func.func @transform_4(%arg0: i32) -> (i32, i32) {
    %c0_i32 = arith.constant 0 : i32
    %c0_i32_0 = arith.constant 0 : i32
    %c0_i32_1 = arith.constant 0 : i32
    return %c0_i32, %c0_i32_0 : i32, i32
  }
  func.func @transform_5(%arg0: i32) -> (i32, i32) {
    %c0_i32 = arith.constant 0 : i32
    %c0_i32_0 = arith.constant 0 : i32
    %c0_i32_1 = arith.constant 0 : i32
    return %c0_i32, %c0_i32_0 : i32, i32
  }
  func.func @transform_6(%arg0: i32) -> (i32, i32) {
    %c0_i32 = arith.constant 0 : i32
    %c0_i32_0 = arith.constant 0 : i32
    %c0_i32_1 = arith.constant 0 : i32
    return %c0_i32, %c0_i32_0 : i32, i32
  }
  func.func @transform_7(%arg0: i32) -> (i32, i32) {
    %c0_i32 = arith.constant 0 : i32
    %c0_i32_0 = arith.constant 0 : i32
    %c0_i32_1 = arith.constant 0 : i32
    return %c0_i32, %c0_i32_0 : i32, i32
  }
  func.func @transform_8(%arg0: i32) -> (i32, i32, i32) {
    %c0_i32 = arith.constant 0 : i32
    %c0_i32_0 = arith.constant 0 : i32
    %c0_i32_1 = arith.constant 0 : i32
    return %arg0, %c0_i32, %c0_i32_0 : i32, i32, i32
  }
  func.func @transform_9(%arg0: i32) -> (i32, i32, i32) {
    %c0_i32 = arith.constant 0 : i32
    %c0_i32_0 = arith.constant 0 : i32
    %c0_i32_1 = arith.constant 0 : i32
    return %arg0, %c0_i32, %c0_i32_0 : i32, i32, i32
  }
  func.func @transform_10(%arg0: i32) -> (i32, i32, i32) {
    %c0_i32 = arith.constant 0 : i32
    %c0_i32_0 = arith.constant 0 : i32
    %c0_i32_1 = arith.constant 0 : i32
    return %arg0, %c0_i32, %c0_i32_0 : i32, i32, i32
  }
  func.func @transform_11(%arg0: i32) -> (i32, i32, i32) {
    %c0_i32 = arith.constant 0 : i32
    %c0_i32_0 = arith.constant 0 : i32
    %c0_i32_1 = arith.constant 0 : i32
    return %arg0, %c0_i32, %c0_i32_0 : i32, i32, i32
  }
  func.func @transform_12(%arg0: i32) -> (i32, i32, i32) {
    %c0_i32 = arith.constant 0 : i32
    %c0_i32_0 = arith.constant 0 : i32
    %c0_i32_1 = arith.constant 0 : i32
    return %arg0, %c0_i32, %c0_i32_0 : i32, i32, i32
  }
}

</mosaic_0001>

<bundles_post_ra>
// kernel: tpu_custom_call.1
= control target key start
LH: loop header
LB: loop body
LE: loop exit
PB: predicated region body
PF: predicated region fallthrough
CT: control target
= control target key end

     0   :  { %s1811_s0 = inlined_call_operand.vmem [shape: f32[2,12,32], index: 0, kind: input, shape index: {}]   ;;  %s1812_s1 = inlined_call_operand.vmem [shape: f32[2,12,1], index: 1, kind: input, shape index: {}]   ;;  %s1813_s2 = inlined_call_operand.vmem [shape: f32[32,128], index: 2, kind: input, shape index: {}]   ;;  %s1814_s3 = inlined_call_operand.vmem [shape: f32[1,128], index: 3, kind: input, shape index: {}]   ;;  %s1815_s4 = inlined_call_operand.hbm [shape: f32[128,128], index: 4, kind: input, shape index: {}]   ;;  %s1816_s5 = inlined_call_operand.vmem [shape: f32[1,128], index: 5, kind: input, shape index: {}]   ;;  %s1817_s6 = inlined_call_operand.vmem [shape: f32[1,128], index: 6, kind: input, shape index: {}]   ;;  %s1818_s7 = inlined_call_operand.vmem [shape: f32[1,128], index: 7, kind: input, shape index: {}]   ;;  %s1819_s8 = inlined_call_operand.vmem [shape: f32[2,12,128], index: 8, kind: output, shape index: {0}]   ;;  %s1820_s9 = inlined_call_operand.vmem [shape: f32[2,12,128], index: 9, kind: output, shape index: {1}]   ;;  %s1821_s10 = inlined_call_operand.hbm [shape: f32[2,1,128], index: 10, kind: output, shape index: {2}]   ;;  %s1822_s11 = inlined_call_operand.vmem [shape: f32[2,12,1], index: 11, kind: output, shape index: {3}]   ;;  %s1823_s12 = inlined_call_operand.vmem [shape: f32[2,12,128], index: 12, kind: output, shape index: {4}]  }
   0x1   :  { %1830 = sst [smem:[#allocation11_spill]] %s1815_s4 }
   0x2   :  { %18 = vsyncpa [#allocation3], 0 }
   0x3   :  { %19 = vsyncpa [#allocation4], 0 }
   0x4   :  { %21 = vsyncpa [#allocation4 + $0x1], 0  ;;  %s1624_s21 = smov 0   ;;  %s1626_s22 = smov 0  }
   0x5   :  { %s1628_s23 = smov 0   ;;  %s1630_s24 = smov 0  }
   0x6 LB: > { %1831 = sst [smem:[#allocation8_spill]] %s1545_s23  ;;  %s1645_s25 = sadd.s32 4294967295, %s1549_s24   ;;  %s1549_s24 = sphi %s1630_s24, %s1844_s24   ;;  %s1545_s23 = sphi %s1628_s23, %s1846_s23   ;;  %s1541_s22 = sphi %s1626_s22, %s1848_s22   ;;  %s1537_s21 = sphi %s1624_s21, %s1847_s21  }
   0x7   : > { %s1151_s26 = sadd.s32 4294967294, %s1549_s24   ;;  %s1649_s27 = sadd.s32 1, %s1549_s24  }
   0x8   : > { %1832 = sst [smem:[#allocation9_spill]] %s1649_s27  ;;  %s264_s28 = sadd.s32 1, %s1545_s23 }
   0x9   : > { %s261_s29 = ssub.s32 %s1549_s24, %s1649_s27  ;;  %p274_p0 = scmp.ne.s32.totalorder %s1545_s23, %s1541_s22 }
   0xa   : > { %p262_p1 = scmp.eq.s32.totalorder %s261_s29, 0  ;;  %p275_p2 = scmp.eq.s32.totalorder %s1645_s25, 1 }
   0xb   : > { %p280_p3 = scmp.ne.s32.totalorder %s1541_s22, %s1537_s21  ;;  %p281_p4 = scmp.eq.s32.totalorder %s1151_s26, 1 }
   0xc   : > { %s1660_s30 = scalar_select %p262_p1, %s1545_s23, %s264_s28  }
   0xd   : > { %p1662_p5 = por %p275_p2, %p274_p0  ;;  %p1666_p6 = por %p281_p4, %p280_p3 }
   0xe   : > { %1833 = sst [smem:[#allocation10_spill]] %s1660_s30  ;;  %p1152_p7 = scmp.ge.s32.totalorder %s1549_s24, 1 }
   0xf   : > { %s1834_s13 = scalar_select %p1662_p5, 1, 0 }
  0x10   : > { %s1835_s14 = scalar_select %p1666_p6, 1, 0 }
  0x11   : > { %p340_p8 = scmp.lt.s32.totalorder %s1549_s24, 3  ;;  %p1825_p9 = scmp.eq.s32.totalorder %s1645_s25, 0 }
  0x12   : > { %s1551_s16 = smov [#allocation2]   ;;  %s1838_s4 = sld [smem:[#allocation11_spill]] }
  0x13   : > { %p1673_p10 = pnand %p1152_p7, %p340_p8  ;;  %s358_s17 = sshll.u32 %s1551_s16, 4  ;;  %s359_s17 = int_to_ptr.vmem [resolvable:$true] %s358_s17 }
  0x15   : > { %s1836_s15 = scalar_select %p1673_p10, 1, 0 }
  0x16   : > { %p1389_p11 = pneg %p1673_p10 }
  0x18   : > { %p1681_p12 = pnand %p1825_p9, %p1389_p11  ;;  %s1455_s26 = scalar_lea.hbm %s1838_s4, 2048 }
  0x19   : > { %p1456_p13 = scmp.ne.s32.totalorder %s1838_s4, %s1455_s26  ;;  %p1462_p3 = scmp.lt.u32.totalorder %s1455_s26, %s1838_s4 }
  0x1a   : > { %p1457_p0 = pneg %p1681_p12 }
  0x1c   : > { %p1458_p1 = pnand %p1457_p0, %p1456_p13 }
  0x1e   : > { %p1459_p2 = pneg %p1458_p1 }
  0x20   : > { %p1464_p4 = pnand %p1462_p3, %p1459_p2 }
  0x22   : > { %1467 = shalt.err (!%p1464_p4)
}
  0x23   : > { %s1468_s23 = scalar_lea.vmem %s359_s17, 2048  ;;  %p1476_p9 = scmp.lt.s32.totalorder %s359_s17, %s359_s17 }
  0x24   : > { %p1469_p7 = scmp.ne.s32.totalorder %s359_s17, %s1468_s23  ;;  %p1477_p6 = scmp.lt.s32.totalorder %s1468_s23, %s1468_s23 }
  0x26   : > { %p1471_p8 = pnand %p1469_p7, %p1457_p0  ;;  %p1478_p5 = por %p1477_p6, %p1476_p9 }
  0x28   : > { %p1472_p11 = pneg %p1471_p8 }
  0x2a   : > { %p1479_p10 = pnand %p1478_p5, %p1472_p11 }
  0x2c   : > { %1482 = shalt.err (!%p1479_p10)
}
  0x2d   : > { %s1552_s19 = smov 128   ;;  %s1553_s20 = smov 8  }
  0x2e   : > { %1392 = dma.hbm_to_vmem [thread:$0]  (!%p1681_p12), %s1838_s4, 2048, %s359_s17, [#allocation3], %s1552_s19, %s1552_s19, %s1553_s20  }
  0x2f   : > { %p1839_p13 = scmp.ne.s32.totalorder %s1836_s15, 0 }
  0x30   : > { %p1840_p1 = scmp.eq.s32.totalorder (!%p1839_p13), %s1645_s25, 0 }
  0x31   : > { %399 = sbr.rel (%p1839_p13) target bundleno = 824 (0x338), region = 52 }
  0x38   : > { %1528 = dma.done.wait (%p1840_p1), [#allocation3], 2048   ;;  %p1841_p0 = pmov %p1840_p1 }
  0x39   : > { %p465_p5 = scmp.lt.s32.totalorder %s1645_s25, 1  ;;  %v1554_v0 = vmov 0   ;;  %vm508_vm0 = vcmask 261120   ;;  %v497_v1 = vld [vmem:[%s1813_s2] sm:$0xff]  ;;  %v498_v2 = vld [vmem:[%s1813_s2 + $0x8] sm:$0xff]  ;;  %v499_v3 = vld [vmem:[%s1813_s2 + $0x10] sm:$0xff] }
  0x3a   : > { %1530 = vsyncadd (%p1841_p0), [#allocation3], 4294965248  ;;  %1439 = vset.pattern.permute.xlu0 %v1554_v0  ;;  %1440 = vset.pattern.permute.xlu1 %v1554_v0  ;;  %v1315_v4 = vpack.c.bf16 %v498_v2, %v497_v1  ;;  %v500_v5 = vld [vmem:[%s1813_s2 + $0x18] sm:$0xff]  ;;  %v629_v10 = vld [vmem:[#allocation2] sm:$0xff]  ;;  %v1555_v37 = vmov 0.0|0.0   ;;  %vm808_vm1 = vcmask 1043456  }
  0x3b   : > { %s466_s23 = scalar_select %p465_p5, %s1645_s25, 1  ;;  %v1319_v7 = vpack.c.bf16 %v500_v5, %v499_v3  ;;  %v630_v13 = vld [vmem:[#allocation2 + $0x8] sm:$0xff]  ;;  %v631_v15 = vld [vmem:[#allocation2 + $0x10] sm:$0xff]  ;;  %v632_v16 = vld [vmem:[#allocation2 + $0x18] sm:$0xff]  ;;  %1323 = vmatprep.subr.bf16.mxu1 %v1555_v37  ;;  %vm1556_vm2 = vmmov 0   ;;  %v1557_v58 = vmov 0.0  }
  0x3c   : > { %1316 = vmatprep.subr.bf16.mxu0 %v1315_v4  ;;  %v1324_v14 = vpack.c.bf16 %v630_v13, %v629_v10  ;;  %v1327_v18 = vpack.c.bf16 %v632_v16, %v631_v15  ;;  %v633_v19 = vld [vmem:[#allocation2 + $0x20] sm:$0xff]  ;;  %v634_v20 = vld [vmem:[#allocation2 + $0x28] sm:$0xff]  ;;  %v635_v22 = vld [vmem:[#allocation2 + $0x30] sm:$0xff]  ;;  %1270 = vmatprep.mubr.msk.f32.mxu1 %vm1556_vm2, %v1557_v58  ;;  %vm925_vm3 = vcmask 93184   ;;  %vm923_vm4 = vcmask 97280   ;;  %s1173_s28 = sshll.u32 %s1645_s25, 4 }
  0x3d   : > { %s1709_s30 = sshll.u32 %s466_s23, 4  ;;  %1318 = vmatpush3.bf16.msra.mxu0 %v1315_v4  ;;  %v1330_v21 = vpack.c.bf16 %v634_v20, %v633_v19  ;;  %v636_v23 = vld [vmem:[#allocation2 + $0x38] sm:$0xff]  ;;  %v637_v25 = vld [vmem:[#allocation2 + $0x40] sm:$0xff]  ;;  %v638_v26 = vld [vmem:[#allocation2 + $0x48] sm:$0xff]  ;;  %v719_v4 = vlaneseq  ;;  %s1771_s18 = scalar_lea.hbm %s1821_s10, %s1173_s28 }
  0x3e   : > { %s469_s15 = scalar_lea.vmem %s1811_s0, %s1709_s30  ;;  %s474_s19 = scalar_lea.vmem %s1812_s1, %s1709_s30  ;;  %1320 = vmatprep.subr.bf16.mxu0 %v1319_v7  ;;  %v1333_v24 = vpack.c.bf16 %v636_v23, %v635_v22  ;;  %v1336_v27 = vpack.c.bf16 %v638_v26, %v637_v25  ;;  %v639_v28 = vld [vmem:[#allocation2 + $0x50] sm:$0xff]  ;;  %v640_v29 = vld [vmem:[#allocation2 + $0x58] sm:$0xff]  ;;  %v641_v31 = vld [vmem:[#allocation2 + $0x60] sm:$0xff]  ;;  %1325 = vmatpush3.bf16.msra.mxu1 %v1324_v14 }
  0x3f   : > { %v495_v6 = vld [vmem:[%s469_s15] sm:$0xff]  ;;  %v593_v9 = vld [vmem:[%s474_s19 + $0x8] sm:$0xf]  ;;  %v1339_v30 = vpack.c.bf16 %v640_v29, %v639_v28  ;;  %v643_v34 = vld [vmem:[#allocation2 + $0x70] sm:$0xff]  ;;  %1326 = vmatprep.subr.bf16.mxu1 %v1555_v37  ;;  %s479_s16 = scalar_lea.vmem %s1819_s8, %s1709_s30  ;;  %s1748_s23 = scalar_lea.vmem %s1823_s12, %s1709_s30  ;;  %v720_v5 = vshrl.u32 %v719_v4, 7 }
  0x40   : > { %1235 = vmatprep.mubr.msk.f32.mxu0 %vm508_vm0, %v495_v6  ;;  %v592_v8 = vld [vmem:[%s474_s19] sm:$0xff]  ;;  %v595_v12 = vsub.f32 1.0, %v593_v9  ;;  %v496_v17 = vld [vmem:[%s469_s15 + $0x8] sm:$0xf]  ;;  %v644_v35 = vld [vmem:[#allocation2 + $0x78] sm:$0xff]  ;;  %921 = vst [vmem:[%s1748_s23] sm:$0xff] %v1557_v58  ;;  %s449_s19 = sand.u32 1, %s1541_s22  }
  0x41   : > { %v594_v11 = vsub.f32 1.0, %v592_v8  ;;  %1322 = vmatpush3.bf16.msra.mxu0 %v1319_v7  ;;  %v642_v32 = vld [vmem:[#allocation2 + $0x68] sm:$0xff]  ;;  %v1345_v36 = vpack.c.bf16 %v644_v35, %v643_v34  ;;  %v1169_v40 = vld [vmem:[%s1814_s3] ss:$0 sm:$0xff]  ;;  %922 = vst [vmem:[%s1748_s23 + $0x8] sm:$0xf] %v1557_v58 }
  0x42   : > { %603 = vperm.xlu1 %1440, %v595_v12   ;;  %1348 = vmatprep.subr.bf16.mxu0 %v1324_v14  ;;  %v1342_v33 = vpack.c.bf16 %v642_v32, %v641_v31  ;;  %v1172_v42 = vld [vmem:[%s1817_s6] ss:$0 sm:$0xff]  ;;  %v721_v6 = vsub.s32 0, %v720_v5  ;;  %s450_s20 = scalar_lea.vmem [#allocation5], %s449_s19  ;;  %s938_s4 = scalar_lea.sflag [#allocation4], %s449_s19 }
  0x43   : > { %598 = vperm.xlu0 %1439, %v594_v11   ;;  %1328 = vmatpush3.bf16.msra.mxu1 %v1327_v18  ;;  %v646_v57 = vld [vmem:[%s1818_s7] sm:$0x1]  ;;  %s966_s29 = sshll.u32 %s450_s20, 4  ;;  %p1842_p9 = scmp.ne.s32.totalorder %s1834_s13, 0  ;;  %s967_s29 = int_to_ptr.vmem [resolvable:$true] %s966_s29 }
  0x44   : > { %1236 = vmatmul.mubr.msk.f32.vlgmr.msra.gmra.mrb[0].mxu0 %vm508_vm0, %v496_v17  ;;  %1329 = vmatprep.subr.bf16.mxu1 %v1555_v37  ;;  %v645_v7 = vld [vmem:[%s1816_s5] sm:$0x1]  ;;  %s1483_s27 = scalar_lea.vmem %s967_s29, 16  ;;  %s1558_s15 = smov [#allocation5]  }
  0x45   : > { %1350 = vmatpush3.bf16.msra.mxu0 %v1324_v14  ;;  %p1484_p6 = scmp.ne.s32.totalorder %s967_s29, %s1483_s27  ;;  %s1487_s26 = sshll.u32 %s1558_s15, 4  ;;  %s1488_s26 = int_to_ptr.vmem [resolvable:$false] %s1487_s26 }
  0x46   : > { %622 = vperm.xlu1 %1440, %v593_v9   ;;  %1352 = vmatprep.subr.bf16.mxu0 %v1327_v18  ;;  %p1490_p2 = scmp.lt.s32.totalorder %s967_s29, %s1488_s26 }
  0x47   : > { %617 = vperm.xlu0 %1439, %v592_v8   ;;  %1331 = vmatpush3.bf16.msra.mxu1 %v1330_v21  ;;  %v722_v8 = vrot.slane %v645_v7, %v721_v6  ;;  %p1485_p10 = pnand %p1484_p6, %p1842_p9 }
  0x48   : > { %1332 = vmatprep.subr.bf16.mxu1 %v1555_v37 }
  0x49   : > { %1354 = vmatpush3.bf16.msra.mxu0 %v1327_v18  ;;  %p1486_p12 = pneg %p1485_p10 }
  0x4a   : > { %1356 = vmatprep.subr.bf16.mxu0 %v1330_v21 }
  0x4b   : > { %1334 = vmatpush3.bf16.msra.mxu1 %v1333_v24 }
  0x4c   : > { %1335 = vmatprep.subr.bf16.mxu1 %v1555_v37 }
  0x4d   : > { %1358 = vmatpush3.bf16.msra.mxu0 %v1330_v21 }
  0x4e   : > { %1360 = vmatprep.subr.bf16.mxu0 %v1333_v24 }
  0x4f   : > { %1337 = vmatpush3.bf16.msra.mxu1 %v1336_v27 }
  0x50   : > { %1338 = vmatprep.subr.bf16.mxu1 %v1555_v37 }
  0x51   : > { %1362 = vmatpush3.bf16.msra.mxu0 %v1333_v24 }
  0x52   : > { %1364 = vmatprep.subr.bf16.mxu0 %v1336_v27 }
  0x53   : > { %1340 = vmatpush3.bf16.msra.mxu1 %v1339_v30 }
  0x54   : > { %1341 = vmatprep.subr.bf16.mxu1 %v1555_v37 }
  0x55   : > { %1366 = vmatpush3.bf16.msra.mxu0 %v1336_v27 }
  0x56   : > { %1368 = vmatprep.subr.bf16.mxu0 %v1339_v30 }
  0x57   : > { %1343 = vmatpush3.bf16.msra.mxu1 %v1342_v33 }
  0x58   : > { %1344 = vmatprep.subr.bf16.mxu1 %v1555_v37 }
  0x59   : > { %1370 = vmatpush3.bf16.msra.mxu0 %v1339_v30 }
  0x5a   : > { %1372 = vmatprep.subr.bf16.mxu0 %v1342_v33 }
  0x5b   : > { %1346 = vmatpush3.bf16.msra.mxu1 %v1345_v36 }
  0x5d   : > { %1374 = vmatpush3.bf16.msra.mxu0 %v1342_v33 }
  0x5e   : > { %1376 = vmatprep.subr.bf16.mxu0 %v1345_v36  ;;  %1271 = vmatmul.mubr.f32.vlgmr.msra.gmra.mrb[0].mxu1 %v646_v57 }
  0x61   : > { %1378 = vmatpush3.bf16.msra.mxu0 %v1345_v36 }
  0xc1   : > { %v604_v39 = vpop.permute.xlu1 %603 }
  0xc2   : > { %v599_v38 = vpop.permute.xlu0 %598 }
  0xc5   : > { %v623_v46 = vpop.permute.xlu1 %622 }
  0xc6   : > { %v618_v43 = vpop.permute.xlu0 %617  ;;  %v626_v53 = vmul.f32 %v1172_v42, %v623_v46 }
  0xc7   : > { %v625_v50 = vmul.f32 %v1172_v42, %v618_v43 }
 0x117   : > { %v1237_v41 = vpop.f32.mrb[0].mxu0 }
 0x118   : > { %v587_v44 = vadd.f32 %v1237_v41, %v1169_v40  ;;  %v581_v45 = vpop.f32.mrb[1].mxu0 }
 0x119   : > { %v582_v47 = vadd.f32 %v1169_v40, %v581_v45 }
 0x11a   : > { %591 = vst [vmem:[%s479_s16 + $0x8] sm:$0xf] %v587_v44  ;;  %v607_v48 = vmul.f32 %v604_v39, %v587_v44  ;;  %v805_v49 = vmul.f32 %v587_v44, %v587_v44 }
 0x11b   : > { %590 = vst [vmem:[%s479_s16] sm:$0xff] %v582_v47  ;;  %v804_v51 = vmul.f32 %v582_v47, %v582_v47  ;;  %v606_v52 = vmul.f32 %v599_v38, %v582_v47  ;;  %s484_s16 = scalar_lea.vmem %s1820_s9, %s1709_s30 }
 0x11c   : > { %v809_v54 = vsel %vm808_vm1, %v805_v49, 0.0  ;;  %v628_v56 = vadd.f32 %v626_v53, %v607_v48 }
 0x11d   : > { %810 = vadd.xlane.f32.xlu1 %v809_v54  ;;  %806 = vadd.xlane.f32.xlu0 %v804_v51  ;;  %v627_v55 = vadd.f32 %v625_v50, %v606_v52 }
 0x11f   : > { %1305 = vmatprep.mubr.f32.mxu0 %v627_v55 }
 0x120   : > { %1306 = vmatmul.mubr.f32.vlgmr.msra.gmra.mrb[2].mxu0 %v628_v56 }
 0x131   : > { %v713_v18 = vpop.f32.mrb[0].mxu1 }
 0x132   : > { %v1272_v19 = vpop.f32.mrb[1].mxu1  ;;  %v714_v34 = vadd.f32 %v713_v18, %v645_v7 }
 0x1aa   : > { %v811_v59 = vpop.xlane.xlu1 %810  ;;  %v807_v60 = vpop.xlane.xlu0 %806 }
 0x1ab   : > { %v820_v61 = vmax.f32 %v811_v59, 1e-16  ;;  %v819_v62 = vmax.f32 %v807_v60, 1e-16 }
 0x1ad   : > { %1441 = vrsqrt.f32 %v820_v61 }
 0x1ae   : > { %1443 = vrsqrt.f32 %v819_v62 }
 0x1b7   : > { %v1442_v63 = vpop.eup %1441 }
 0x1b8   : > { %v1444_v0 = vpop.eup %1443  ;;  %v824_v1 = vmul.f32 %v1442_v63, %v587_v44 }
 0x1b9   : > { %v823_v2 = vmul.f32 %v1444_v0, %v582_v47 }
 0x1bb   : > { %1312 = vmatprep.mubr.f32.mxu1 %v823_v2  ;;  %v1379_v3 = vpack.c.bf16 %v824_v1, %v823_v2 }
 0x1bd   : > { %1380 = vmatprep.subr.bf16.mxu1 %v1379_v3 }
 0x1be   : > { %1382 = vmatpush3.bf16.xpose.msra.mxu1 %v1379_v3 }
 0x1c5   : > { %1313 = vmatmul.mubr.f32.vlgmr.msra.gmra.mrb[2].mxu1 %v824_v1 }
 0x1f3   : > { %v1307_v9 = vpop.f32.mrb[2].mxu0 }
 0x1f4   : > { %v796_v10 = vadd.f32 %v1307_v9, %v722_v8  ;;  %v790_v11 = vpop.f32.mrb[3].mxu0 }
 0x1f5   : > { %v791_v12 = vadd.f32 %v790_v11, %v722_v8 }
 0x1f6   : > { %1445 = vtanh.f32 %v796_v10 }
 0x1f7   : > { %1447 = vtanh.f32 %v791_v12 }
 0x200   : > { %v1446_v13 = vpop.eup %1445 }
 0x201   : > { %v1448_v14 = vpop.eup %1447  ;;  %803 = vst [vmem:[%s484_s16 + $0x8] sm:$0xf] %v1446_v13  ;;  %v813_v15 = vmul.f32 %v1446_v13, %v1446_v13 }
 0x202   : > { %802 = vst [vmem:[%s484_s16] sm:$0xff] %v1448_v14  ;;  %v812_v17 = vmul.f32 %v1448_v14, %v1448_v14  ;;  %s1489_s16 = scalar_lea.vmem %s1488_s26, 32 }
 0x203   : > { %v816_v16 = vsel %vm808_vm1, %v813_v15, 0.0  ;;  %p1491_p3 = scmp.lt.s32.totalorder %s1489_s16, %s1483_s27 }
 0x204   : > { %817 = vadd.xlane.f32.xlu0 %v816_v16 }
 0x205   : > { %p1492_p4 = por %p1491_p3, %p1490_p2 }
 0x207   : > { %p1493_p7 = pnand %p1492_p4, %p1486_p12 }
 0x208   : > { %814 = vadd.xlane.f32.xlu0 %v812_v17 }
 0x291   : > { %v818_v20 = vpop.xlane.xlu0 %817 }
 0x292   : > { %v826_v21 = vmax.f32 %v818_v20, 1e-16 }
 0x294   : > { %1449 = vrsqrt.f32 %v826_v21 }
 0x295   : > { %v815_v22 = vpop.xlane.xlu0 %814 }
 0x296   : > { %v825_v23 = vmax.f32 %v815_v22, 1e-16 }
 0x298   : > { %1451 = vrsqrt.f32 %v825_v23  ;;  %v1314_v24 = vpop.f32.mrb[2].mxu1 }
 0x299   : > { %v920_v25 = vmul.f32 2.0, %v1314_v24  ;;  %v910_v26 = vpop.f32.mrb[3].mxu1  ;;  %1453 = vtanh.f32 %v714_v34 }
 0x29a   : > { %v919_v27 = vmul.f32 2.0, %v910_v26 }
 0x29b   : > { %926 = vst.msk [vmem:[%s1748_s23 + $0x8] sm:$0xf] %vm925_vm3, %v920_v25 }
 0x29c   : > { %924 = vst.msk [vmem:[%s1748_s23] sm:$0xff] %vm923_vm4, %v919_v27 }
 0x29e   : > { %v1450_v28 = vpop.eup %1449 }
 0x29f   : > { %v830_v29 = vmul.f32 %v1450_v28, %v1446_v13 }
 0x2a1   : > { %v832_v30 = vmul.f32 %v830_v29, %v824_v1 }
 0x2a2   : > { %v1452_v31 = vpop.eup %1451 }
 0x2a3   : > { %v835_v32 = vsel %vm808_vm1, %v832_v30, 0.0  ;;  %v829_v33 = vmul.f32 %v1452_v31, %v1448_v14  ;;  %v1454_v36 = vpop.eup %1453 }
 0x2a4   : > { %836 = vadd.xlane.f32.xlu0 %v835_v32  ;;  %801 = vst [vmem:[%s450_s20] sm:$0x1] %v1454_v36 }
 0x2a5   : > { %v831_v35 = vmul.f32 %v829_v33, %v823_v2 }
 0x2a7   : > { %833 = vadd.xlane.f32.xlu1 %v831_v35 }
 0x2a8   : > { %1496 = shalt.err (!%p1493_p7)
}
 0x2a9   : > { %s1497_s25 = scalar_lea.hbm %s1771_s18, 16  ;;  %s1501_s28 = scalar_lea.hbm %s1821_s10, 32 }
 0x2aa   : > { %p1498_p8 = scmp.ne.s32.totalorder %s1771_s18, %s1497_s25  ;;  %p1502_p1 = scmp.lt.u32.totalorder %s1771_s18, %s1821_s10 }
 0x2ab   : > { %p1503_p0 = scmp.lt.u32.totalorder %s1501_s28, %s1497_s25  ;;  %p1505_p6 = scmp.lt.u32.totalorder %s1497_s25, %s1771_s18 }
 0x2ac   : > { %p1499_p11 = pnand %p1498_p8, %p1842_p9 }
 0x2ad   : > { %p1504_p5 = por %p1503_p0, %p1502_p1 }
 0x2ae   : > { %p1500_p13 = pneg %p1499_p11 }
 0x2af   : > { %p1506_p10 = por %p1505_p6, %p1504_p5 }
 0x2b1   : > { %p1507_p12 = pnand %p1506_p10, %p1500_p13 }
 0x2b3   : > { %1510 = shalt.err (!%p1507_p12)
}
 0x2b4   : > { %1387 = dma.vmem_to_hbm [thread:$0]  (%p1842_p9), %s967_s29, 16, %s1771_s18, %s938_s4   ;;  %vm842_vm5 = vcmask 3072   ;;  %vm840_vm6 = vcmask 7168  }
 0x2b5   : > { %s489_s26 = scalar_lea.vmem %s1822_s11, %s1709_s30 }
 0x331   : > { %v837_v37 = vpop.xlane.xlu0 %836 }
 0x332   : > { %v839_v38 = vmul.f32 2.0, %v837_v37 }
 0x334   : > { %843 = vst.msk [vmem:[%s489_s26 + $0x8] sm:$0xf] %vm842_vm5, %v839_v38  ;;  %v834_v39 = vpop.xlane.xlu1 %833 }
 0x335   : > { %v838_v40 = vmul.f32 2.0, %v834_v39 }
 0x337   : > { %841 = vst.msk [vmem:[%s489_s26] sm:$0xff] %vm840_vm6, %v838_v40 }
 0x338 PF: > { %p1399_p2 = scmp.ge.s32.totalorder %s1549_s24, 2  ;;  %s1000_s13 = sand.u32 1, %s1537_s21  }
 0x339   : > { %p1843_p3 = scmp.ne.s32.totalorder %s1835_s14, 0  ;;  %s1001_s29 = scalar_lea.sflag [#allocation4], %s1000_s13 }
 0x33b   : > { %p1394_p9 = pnand %p1399_p2, %p1843_p3 }
 0x33d   : > { %1532 = dma.done.wait (!%p1394_p9), %s1001_s29, 16  }
 0x33e   : > { %1534 = vsyncadd (!%p1394_p9), %s1001_s29, 4294967280  ;;  %s1844_s24 = sld [smem:[#allocation9_spill]]  ;;  %s1845_s30 = sld [smem:[#allocation8_spill]] }
 0x33f   : > { %s1846_s23 = sld [smem:[#allocation10_spill]]  ;;  %s1847_s21 = smov %s1541_s22 }
 0x344   : > { %p24_p4 = scmp.ge.s32.totalorder %s1844_s24, 4   ;;  %s1848_s22 = smov %s1845_s30 }
 0x346   :  { %26 = sbr.rel (!%p24_p4) target bundleno = 6 (0x6), region = 143 }
 0x34d   :  { %1021 = vsyncpa [#allocation3], 1 }
 0x34e   :  { %1023 = vsyncpa [#allocation3 + $0x1], 1 }
 0x34f   :  { %1024 = vsyncpa [#allocation4], 1 }
 0x350   :  { %1026 = vsyncpa [#allocation4 + $0x1], 1 }

</bundles_post_ra>
